<compile_context>
chip_gen: v7x
topology: tpu7x:2x2x1
jax: 0.10.0
libtpu: 0.0.40
codegen_flags: <defaults>
</compile_context>

<pallas_src>
import functools
import math

import jax
import jax.numpy as jnp
from jax import lax
from jax.experimental import pallas as pl
from jax.experimental.pallas import tpu as pltpu


_INV_SQRT2 = 1.0 / math.sqrt(2.0)


# ----------------------------- Pallas kernel ------------------------------ #
def _season_mix_kernel(*refs, n_scales, mxu_dtype, approx_gelu):
    """Fused bottom-up season mixing for one (batch, channel-tile) grid point.

    refs = [season_0 .. season_{n-1},              # (TC, L_i) input tiles
            w1_0, b1_0, w2_0, b2_0, ...,           # n-1 layers, full-size, resident
            out_0 .. out_{n-1}]                    # (L_i, TC) output tiles
    Weights are PyTorch nn.Linear layout [out, in]; biases are [out, 1].
    """
    n = n_scales
    season_refs = refs[:n]
    w_refs = refs[n:n + 4 * (n - 1)]
    out_refs = refs[n + 4 * (n - 1):]

    def dot_f32(a, b):
        # bf16 (or other) MXU operands, f32 accumulation.
        if mxu_dtype is not None:
            a = a.astype(mxu_dtype)
            b = b.astype(mxu_dtype)
        return jnp.dot(a, b, preferred_element_type=jnp.float32)

    def gelu(h):
        if approx_gelu:
            # tanh approximation runs on the EUP slot (free under the MXU).
            return jax.nn.gelu(h, approximate=True)
        # exact erf GELU, same as torch.nn.GELU() default (VPU polynomial).
        return 0.5 * h * (1.0 + lax.erf(h * _INV_SQRT2))

    # Transpose-on-load: [TC, L_0] -> [L_0, TC].  Channels stay on lanes for the whole
    # chain -> lane-dense stores and full-width MXU N-dim; the transpose is reused by
    # both the first matmul and out_season_list[0].
    out_high = season_refs[0][...].astype(jnp.float32).T           # [L_0, TC]
    out_refs[0][...] = out_high.astype(out_refs[0].dtype)
    out_low = season_refs[1][...].astype(jnp.float32).T            # [L_1, TC]

    for i in range(n - 1):
        w1 = w_refs[4 * i + 0][...]                                 # [L_{i+1}, L_i]
        b1 = w_refs[4 * i + 1][...].astype(jnp.float32)             # [L_{i+1}, 1]
        w2 = w_refs[4 * i + 2][...]                                 # [L_{i+1}, L_{i+1}]
        b2 = w_refs[4 * i + 3][...].astype(jnp.float32)             # [L_{i+1}, 1]

        h = dot_f32(w1, out_high) + b1                              # [L_{i+1}, TC]
        h = gelu(h)
        y = dot_f32(w2, h) + b2                                     # [L_{i+1}, TC]

        out_low = out_low + y
        out_high = out_low
        if i + 2 <= n - 1:
            out_low = season_refs[i + 2][...].astype(jnp.float32).T
        # Stored directly — already [L_{i+1}, TC], no per-layer transpose.
        out_refs[i + 1][...] = out_high.astype(out_refs[i + 1].dtype)


# ------------------------------ Tiling helpers ------------------------------ #
def _round_up(x, m):
    return ((x + m - 1) // m) * m


def _vmem_budget_bytes():
    """~5/8 of physical VMEM: ~80 MiB on 128 MiB chips (v5e/v6e), ~40 MiB on v7x."""
    cap = 128 * 1024 * 1024
    try:
        info = pltpu.get_tpu_info()
        cap = int(getattr(info, "vmem_capacity_bytes", cap) or cap)
    except Exception:
        pass
    return (cap * 5) // 8


def _working_set_bytes(tc, lengths, io_itemsize, params_bytes):
    io = 2 * 2 * sum(lengths) * tc * io_itemsize   # (in + out) tiles, double-buffered
    tmp = 4 * sum(lengths) * tc * 4                # f32 temporaries inside the body
    return io + tmp + 2 * params_bytes             # weights: worst-case double-buffered


def _pick_c_tile(C, lengths, io_itemsize, params_bytes, budget_bytes):
    """Largest channel tile whose working set fits the (generation-aware) budget."""
    def fits(tc):
        return (_working_set_bytes(tc, lengths, io_itemsize, params_bytes)
                + (2 << 20)) <= budget_bytes

    if C <= 256 or fits(C):
        return C
    # Prefer multiples of 256 (full MXU tile on v6e/v7x), fall back to 128 multiples.
    candidates = list(range((C // 256) * 256, 255, -256)) + \
                 list(range((C // 128) * 128, 127, -128))
    for tc in candidates:
        if fits(tc):
            return tc
    return 128


# --------------------------------- Wrapper ----------------------------------- #
def multi_scale_season_mixing(season_list, params, *, c_tile=None,
                              mxu_dtype=jnp.bfloat16, approx_gelu=False):
    """JAX/Pallas equivalent of MultiScaleSeasonMixing.forward.

    season_list[i]: [B, C, L_i]   (channels-first, time last)
    params[i] = (w1 [L_{i+1}, L_i], b1 [L_{i+1}, 1],
                 w2 [L_{i+1}, L_{i+1}], b2 [L_{i+1}, 1])   # PyTorch nn.Linear layout
    Returns list of [B, L_i, C] arrays (already permuted like the PyTorch module).
    mxu_dtype: dtype for MXU operands (f32 accumulation, f32 elementwise math);
               None keeps full-f32 matmuls for bit-tight parity.
    """
    n = len(season_list)
    assert n >= 2 and len(params) == n - 1
    B, C, _ = season_list[0].shape
    lengths = [int(s.shape[-1]) for s in season_list]
    dtype = season_list[0].dtype
    itemsize = jnp.dtype(dtype).itemsize

    # Pre-cast MXU weights in the wrapper (halves their HBM/VMEM traffic for bf16);
    # biases stay f32 — they are added after the f32 accumulation.
    weight_inputs = []
    for (w1, b1, w2, b2) in params:
        if mxu_dtype is not None:
            w1 = w1.astype(mxu_dtype)
            w2 = w2.astype(mxu_dtype)
        weight_inputs.extend([w1, b1.astype(jnp.float32), w2, b2.astype(jnp.float32)])
    params_bytes = sum(int(w.size) * jnp.dtype(w.dtype).itemsize for w in weight_inputs)

    budget = _vmem_budget_bytes()
    if c_tile is None:
        TC = _pick_c_tile(C, lengths, itemsize, params_bytes, budget)
        # v7x has 2 TensorCores: keep the parallel grid extent even when possible.
        if (B * pl.cdiv(C, TC)) % 2 == 1 and pl.cdiv(C, TC) == 1 and C >= 256:
            TC = _round_up((C + 1) // 2, 128)
    else:
        TC = int(c_tile)
    TC = min(TC, C)

    grid = (B, pl.cdiv(C, TC))
    inputs = list(season_list) + weight_inputs

    # ---- inputs: season tiles (channels on sublanes, transposed inside the kernel) ----
    season_specs = [pl.BlockSpec((None, TC, L), lambda b, c: (b, c, 0)) for L in lengths]
    # ---- outputs: permuted [B, L_i, C], C on lanes (dense stores) ----
    out_shape = tuple(jax.ShapeDtypeStruct((B, L, C), dtype) for L in lengths)
    out_specs = tuple(pl.BlockSpec((None, L, TC), lambda b, c: (b, 0, c)) for L in lengths)

    # ---- advisory cost estimate ----
    M = B * C
    flops = 0
    transcendentals = 0
    for i in range(n - 1):
        lin, lout = lengths[i], lengths[i + 1]
        flops += 2 * M * (lin * lout + lout * lout)
        transcendentals += M * lout
    bytes_accessed = 2 * M * sum(lengths) * itemsize + params_bytes
    cost = pl.CostEstimate(flops=flops, transcendentals=transcendentals,
                           bytes_accessed=bytes_accessed)

    need = _working_set_bytes(TC, lengths, itemsize, params_bytes)
    vmem_limit = int(min(budget, max(32 << 20, need + (4 << 20))))

    kernel = functools.partial(_season_mix_kernel, n_scales=n,
                               mxu_dtype=mxu_dtype, approx_gelu=approx_gelu)
    cparams = pltpu.CompilerParams(
        dimension_semantics=("parallel", "parallel"),
        vmem_limit_bytes=vmem_limit)

    def _run(single_buffer_weights):
        in_specs = list(season_specs)
        for w in weight_inputs:
            if single_buffer_weights:
                # Constant index_map -> never re-DMA'd; single buffer halves their VMEM.
                spec = pl.BlockSpec(w.shape, lambda b, c: (0, 0),
                                    pipeline_mode=pl.Buffered(1))
            else:
                spec = pl.BlockSpec(w.shape, lambda b, c: (0, 0))
            in_specs.append(spec)
        return pl.pallas_call(
            kernel,
            out_shape=out_shape,
            grid=grid,
            in_specs=in_specs,
            out_specs=out_specs,
            compiler_params=cparams,
            cost_estimate=cost,
        )(*inputs)

    try:
        outs = _run(single_buffer_weights=True)
    except Exception:
        # TODO(synk): this jax build rejects pl.Buffered(1) on pallas_call BlockSpecs;
        # fall back to default double-buffered (still resident) weight specs.
        outs = _run(single_buffer_weights=False)
    return list(outs)


# ------------------------------ Params init -------------------------------- #
def init_params(key, seq_len, down_sampling_window, down_sampling_layers,
                dtype=jnp.float32):
    """PyTorch nn.Linear layout: weight [out_features, in_features], bias [out, 1]."""
    params = []
    for i in range(down_sampling_layers):
        lin = seq_len // down_sampling_window ** i
        lout = seq_len // down_sampling_window ** (i + 1)
        key, k1, k2, k3, k4 = jax.random.split(key, 5)
        bound1 = 1.0 / math.sqrt(lin)
        bound2 = 1.0 / math.sqrt(lout)
        w1 = jax.random.uniform(k1, (lout, lin), dtype, -bound1, bound1)
        b1 = jax.random.uniform(k2, (lout, 1), dtype, -bound1, bound1)
        w2 = jax.random.uniform(k3, (lout, lout), dtype, -bound2, bound2)
        b2 = jax.random.uniform(k4, (lout, 1), dtype, -bound2, bound2)
        params.append((w1, b1, w2, b2))
    return params


# ------------------------------ Reference ----------------------------------- #
def _reference(season_list, params):
    out_high = season_list[0]
    out_low = season_list[1]
    outs = [jnp.swapaxes(out_high, 1, 2)]
    n = len(season_list)
    for i in range(n - 1):
        w1, b1, w2, b2 = params[i]
        h = jnp.einsum("bcl,ol->bco", out_high, w1) + b1[:, 0]
        h = 0.5 * h * (1.0 + lax.erf(h / math.sqrt(2.0)))
        y = jnp.einsum("bco,po->bcp", h, w2) + b2[:, 0]
        out_low = out_low + y
        out_high = out_low
        if i + 2 <= n - 1:
            out_low = season_list[i + 2]
        outs.append(jnp.swapaxes(out_high, 1, 2))
    return outs


def _run_case(key, batch, d_model, seq_len, window, layers, c_tile=None,
              mxu_dtype=jnp.bfloat16, tol=5e-2):
    key, pkey = jax.random.split(key)
    params = init_params(pkey, seq_len, window, layers)
    season_list = []
    for i in range(layers + 1):
        key, sk = jax.random.split(key)
        L_i = seq_len // window ** i
        season_list.append(jax.random.normal(sk, (batch, d_model, L_i), jnp.float32))

    outs = multi_scale_season_mixing(season_list, params, c_tile=c_tile,
                                     mxu_dtype=mxu_dtype)
    outs = jax.block_until_ready(outs)
    refs = _reference(season_list, params)
    for o, r in zip(outs, refs):
        assert o.shape == r.shape, (o.shape, r.shape)
        assert jnp.allclose(o, r, atol=tol, rtol=tol), float(jnp.max(jnp.abs(o - r)))
    return key


# --------------------------------- Main ------------------------------------- #
if __name__ == "__main__":
    key = jax.random.PRNGKey(0)

    # Case A: tiny config consistent with the module; exact f32 MXU path, tight parity.
    key = _run_case(key, batch=2, d_model=8, seq_len=16, window=2, layers=2,
                    mxu_dtype=None, tol=1e-4)

    # Case B: larger config exercising the (B, C-tile) grid, lane-dense stores and the
    # default bf16-operand MXU path (f32 accumulation) -> looser tolerance.
    key = _run_case(key, batch=2, d_model=256, seq_len=256, window=2, layers=3,
                    c_tile=128, mxu_dtype=jnp.bfloat16, tol=5e-2)

    print("KERNEL_OK")
</pallas_src>

<mosaic_0001>
module attributes {stable_mosaic.version = 11 : i64} {
  func.func @_season_mix_kernel(%arg0: i32, %arg1: i32, %arg2: memref<1x8x16xf32, #tpu.memory_space<vmem>>, %arg3: memref<1x8x8xf32, #tpu.memory_space<vmem>>, %arg4: memref<1x8x4xf32, #tpu.memory_space<vmem>>, %arg5: memref<8x16xf32, #tpu.memory_space<vmem>>, %arg6: memref<8x1xf32, #tpu.memory_space<vmem>>, %arg7: memref<8x8xf32, #tpu.memory_space<vmem>>, %arg8: memref<8x1xf32, #tpu.memory_space<vmem>>, %arg9: memref<4x8xf32, #tpu.memory_space<vmem>>, %arg10: memref<4x1xf32, #tpu.memory_space<vmem>>, %arg11: memref<4x4xf32, #tpu.memory_space<vmem>>, %arg12: memref<4x1xf32, #tpu.memory_space<vmem>>, %arg13: memref<1x16x8xf32, #tpu.memory_space<vmem>>, %arg14: memref<1x8x8xf32, #tpu.memory_space<vmem>>, %arg15: memref<1x4x8xf32, #tpu.memory_space<vmem>>) attributes {dimension_semantics = [#tpu.dimension_semantics<parallel>, #tpu.dimension_semantics<parallel>], iteration_bounds = array<i64: 2, 1>, scalar_prefetch = 0 : i64, scratch_operands = 0 : i64, tpu.core_type = #tpu.core_type<tc>, window_params = [{transform_indices = @transform_0, window_bounds = array<i64: 1, 8, 16>}, {transform_indices = @transform_1, window_bounds = array<i64: 1, 8, 8>}, {transform_indices = @transform_2, window_bounds = array<i64: 1, 8, 4>}, {pipeline_mode = #tpu.pipeline_mode<synchronous>, transform_indices = @transform_3, window_bounds = array<i64: 8, 16>}, {pipeline_mode = #tpu.pipeline_mode<synchronous>, transform_indices = @transform_4, window_bounds = array<i64: 8, 1>}, {pipeline_mode = #tpu.pipeline_mode<synchronous>, transform_indices = @transform_5, window_bounds = array<i64: 8, 8>}, {pipeline_mode = #tpu.pipeline_mode<synchronous>, transform_indices = @transform_6, window_bounds = array<i64: 8, 1>}, {pipeline_mode = #tpu.pipeline_mode<synchronous>, transform_indices = @transform_7, window_bounds = array<i64: 4, 8>}, {pipeline_mode = #tpu.pipeline_mode<synchronous>, transform_indices = @transform_8, window_bounds = array<i64: 4, 1>}, {pipeline_mode = #tpu.pipeline_mode<synchronous>, transform_indices = @transform_9, window_bounds = array<i64: 4, 4>}, {pipeline_mode = #tpu.pipeline_mode<synchronous>, transform_indices = @transform_10, window_bounds = array<i64: 4, 1>}, {transform_indices = @transform_11, window_bounds = array<i64: 1, 16, 8>}, {transform_indices = @transform_12, window_bounds = array<i64: 1, 8, 8>}, {transform_indices = @transform_13, window_bounds = array<i64: 1, 4, 8>}]} {
    %c0 = arith.constant 0 : index
    %c0_0 = arith.constant 0 : index
    %c0_1 = arith.constant 0 : index
    %0 = vector.load %arg2[%c0, %c0_0, %c0_1] : memref<1x8x16xf32, #tpu.memory_space<vmem>>, vector<1x8x16xf32>
    %1 = vector.shape_cast %0 : vector<1x8x16xf32> to vector<8x16xf32>
    %2 = tpu.transpose %1, [1, 0] : vector<8x16xf32> -> vector<16x8xf32>
    %c0_2 = arith.constant 0 : index
    %c0_3 = arith.constant 0 : index
    %c0_4 = arith.constant 0 : index
    %3 = vector.load %arg13[%c0_2, %c0_3, %c0_4] : memref<1x16x8xf32, #tpu.memory_space<vmem>>, vector<1x16x8xf32>
    %4 = vector.shape_cast %3 : vector<1x16x8xf32> to vector<16x8xf32>
    %5 = vector.shape_cast %2 : vector<16x8xf32> to vector<1x16x8xf32>
    tpu.vector_store %arg13[%c0_2, %c0_3, %c0_4], %5 {strides = array<i32>} : memref<1x16x8xf32, #tpu.memory_space<vmem>>, vector<1x16x8xf32>,
    %c0_5 = arith.constant 0 : index
    %c0_6 = arith.constant 0 : index
    %c0_7 = arith.constant 0 : index
    %6 = vector.load %arg3[%c0_5, %c0_6, %c0_7] : memref<1x8x8xf32, #tpu.memory_space<vmem>>, vector<1x8x8xf32>
    %7 = vector.shape_cast %6 : vector<1x8x8xf32> to vector<8x8xf32>
    %8 = tpu.transpose %7, [1, 0] : vector<8x8xf32> -> vector<8x8xf32>
    %c0_8 = arith.constant 0 : index
    %c0_9 = arith.constant 0 : index
    %9 = vector.load %arg5[%c0_8, %c0_9] : memref<8x16xf32, #tpu.memory_space<vmem>>, vector<8x16xf32>
    %c0_10 = arith.constant 0 : index
    %c0_11 = arith.constant 0 : index
    %10 = vector.load %arg6[%c0_10, %c0_11] : memref<8x1xf32, #tpu.memory_space<vmem>>, vector<8x1xf32>
    %c0_12 = arith.constant 0 : index
    %c0_13 = arith.constant 0 : index
    %11 = vector.load %arg7[%c0_12, %c0_13] : memref<8x8xf32, #tpu.memory_space<vmem>>, vector<8x8xf32>
    %c0_14 = arith.constant 0 : index
    %c0_15 = arith.constant 0 : index
    %12 = vector.load %arg8[%c0_14, %c0_15] : memref<8x1xf32, #tpu.memory_space<vmem>>, vector<8x1xf32>
    %cst = arith.constant dense<0.000000e+00> : vector<8x8xf32>
    %13 = tpu.matmul %9, %2, %cst {dimension_numbers = #tpu.dot_dimension_numbers<[1], [0], [0], [1], [0, 0, 1, 1], [], []>} : vector<8x16xf32>, vector<16x8xf32>, vector<8x8xf32> -> vector<8x8xf32>
    %14 = vector.broadcast %10 : vector<8x1xf32> to vector<8x8xf32>
    %15 = arith.addf %13, %14 : vector<8x8xf32>
    %cst_16 = arith.constant 5.000000e-01 : f32
    %16 = vector.broadcast %cst_16 : f32 to vector<8x8xf32>
    %17 = arith.mulf %16, %15 : vector<8x8xf32>
    %cst_17 = arith.constant 0.707106769 : f32
    %18 = vector.broadcast %cst_17 : f32 to vector<8x8xf32>
    %19 = arith.mulf %15, %18 : vector<8x8xf32>
    %20 = math.erf %19 : vector<8x8xf32>
    %cst_18 = arith.constant 1.000000e+00 : f32
    %21 = vector.broadcast %cst_18 : f32 to vector<8x8xf32>
    %22 = arith.addf %21, %20 : vector<8x8xf32>
    %23 = arith.mulf %17, %22 : vector<8x8xf32>
    %cst_19 = arith.constant dense<0.000000e+00> : vector<8x8xf32>
    %24 = tpu.matmul %11, %23, %cst_19 {dimension_numbers = #tpu.dot_dimension_numbers<[1], [0], [0], [1], [0, 0, 1, 1], [], []>} : vector<8x8xf32>, vector<8x8xf32>, vector<8x8xf32> -> vector<8x8xf32>
    %25 = vector.broadcast %12 : vector<8x1xf32> to vector<8x8xf32>
    %26 = arith.addf %24, %25 : vector<8x8xf32>
    %27 = arith.addf %8, %26 : vector<8x8xf32>
    %c0_20 = arith.constant 0 : index
    %c0_21 = arith.constant 0 : index
    %c0_22 = arith.constant 0 : index
    %28 = vector.load %arg4[%c0_20, %c0_21, %c0_22] : memref<1x8x4xf32, #tpu.memory_space<vmem>>, vector<1x8x4xf32>
    %29 = vector.shape_cast %28 : vector<1x8x4xf32> to vector<8x4xf32>
    %30 = tpu.transpose %29, [1, 0] : vector<8x4xf32> -> vector<4x8xf32>
    %c0_23 = arith.constant 0 : index
    %c0_24 = arith.constant 0 : index
    %c0_25 = arith.constant 0 : index
    %31 = vector.load %arg14[%c0_23, %c0_24, %c0_25] : memref<1x8x8xf32, #tpu.memory_space<vmem>>, vector<1x8x8xf32>
    %32 = vector.shape_cast %31 : vector<1x8x8xf32> to vector<8x8xf32>
    %33 = vector.shape_cast %27 : vector<8x8xf32> to vector<1x8x8xf32>
    tpu.vector_store %arg14[%c0_23, %c0_24, %c0_25], %33 {strides = array<i32>} : memref<1x8x8xf32, #tpu.memory_space<vmem>>, vector<1x8x8xf32>,
    %c0_26 = arith.constant 0 : index
    %c0_27 = arith.constant 0 : index
    %34 = vector.load %arg9[%c0_26, %c0_27] : memref<4x8xf32, #tpu.memory_space<vmem>>, vector<4x8xf32>
    %c0_28 = arith.constant 0 : index
    %c0_29 = arith.constant 0 : index
    %35 = vector.load %arg10[%c0_28, %c0_29] : memref<4x1xf32, #tpu.memory_space<vmem>>, vector<4x1xf32>
    %c0_30 = arith.constant 0 : index
    %c0_31 = arith.constant 0 : index
    %36 = vector.load %arg11[%c0_30, %c0_31] : memref<4x4xf32, #tpu.memory_space<vmem>>, vector<4x4xf32>
    %c0_32 = arith.constant 0 : index
    %c0_33 = arith.constant 0 : index
    %37 = vector.load %arg12[%c0_32, %c0_33] : memref<4x1xf32, #tpu.memory_space<vmem>>, vector<4x1xf32>
    %cst_34 = arith.constant dense<0.000000e+00> : vector<4x8xf32>
    %38 = tpu.matmul %34, %27, %cst_34 {dimension_numbers = #tpu.dot_dimension_numbers<[1], [0], [0], [1], [0, 0, 1, 1], [], []>} : vector<4x8xf32>, vector<8x8xf32>, vector<4x8xf32> -> vector<4x8xf32>
    %39 = vector.broadcast %35 : vector<4x1xf32> to vector<4x8xf32>
    %40 = arith.addf %38, %39 : vector<4x8xf32>
    %cst_35 = arith.constant 5.000000e-01 : f32
    %41 = vector.broadcast %cst_35 : f32 to vector<4x8xf32>
    %42 = arith.mulf %41, %40 : vector<4x8xf32>
    %cst_36 = arith.constant 0.707106769 : f32
    %43 = vector.broadcast %cst_36 : f32 to vector<4x8xf32>
    %44 = arith.mulf %40, %43 : vector<4x8xf32>
    %45 = math.erf %44 : vector<4x8xf32>
    %cst_37 = arith.constant 1.000000e+00 : f32
    %46 = vector.broadcast %cst_37 : f32 to vector<4x8xf32>
    %47 = arith.addf %46, %45 : vector<4x8xf32>
    %48 = arith.mulf %42, %47 : vector<4x8xf32>
    %cst_38 = arith.constant dense<0.000000e+00> : vector<4x8xf32>
    %49 = tpu.matmul %36, %48, %cst_38 {dimension_numbers = #tpu.dot_dimension_numbers<[1], [0], [0], [1], [0, 0, 1, 1], [], []>} : vector<4x4xf32>, vector<4x8xf32>, vector<4x8xf32> -> vector<4x8xf32>
    %50 = vector.broadcast %37 : vector<4x1xf32> to vector<4x8xf32>
    %51 = arith.addf %49, %50 : vector<4x8xf32>
    %52 = arith.addf %30, %51 : vector<4x8xf32>
    %c0_39 = arith.constant 0 : index
    %c0_40 = arith.constant 0 : index
    %c0_41 = arith.constant 0 : index
    %53 = vector.load %arg15[%c0_39, %c0_40, %c0_41] : memref<1x4x8xf32, #tpu.memory_space<vmem>>, vector<1x4x8xf32>
    %54 = vector.shape_cast %53 : vector<1x4x8xf32> to vector<4x8xf32>
    %55 = vector.shape_cast %52 : vector<4x8xf32> to vector<1x4x8xf32>
    tpu.vector_store %arg15[%c0_39, %c0_40, %c0_41], %55 {strides = array<i32>} : memref<1x4x8xf32, #tpu.memory_space<vmem>>, vector<1x4x8xf32>,
    return
  }
  func.func @transform_0(%arg0: i32, %arg1: i32) -> (i32, i32, i32) {
    %c0_i32 = arith.constant 0 : i32
    %c0_i32_0 = arith.constant 0 : i32
    return %arg0, %arg1, %c0_i32 : i32, i32, i32
  }
  func.func @transform_1(%arg0: i32, %arg1: i32) -> (i32, i32, i32) {
    %c0_i32 = arith.constant 0 : i32
    %c0_i32_0 = arith.constant 0 : i32
    return %arg0, %arg1, %c0_i32 : i32, i32, i32
  }
  func.func @transform_2(%arg0: i32, %arg1: i32) -> (i32, i32, i32) {
    %c0_i32 = arith.constant 0 : i32
    %c0_i32_0 = arith.constant 0 : i32
    return %arg0, %arg1, %c0_i32 : i32, i32, i32
  }
  func.func @transform_3(%arg0: i32, %arg1: i32) -> (i32, i32) {
    %c0_i32 = arith.constant 0 : i32
    %c0_i32_0 = arith.constant 0 : i32
    %c0_i32_1 = arith.constant 0 : i32
    return %c0_i32, %c0_i32_0 : i32, i32
  }
  func.func @transform_4(%arg0: i32, %arg1: i32) -> (i32, i32) {
    %c0_i32 = arith.constant 0 : i32
    %c0_i32_0 = arith.constant 0 : i32
    %c0_i32_1 = arith.constant 0 : i32
    return %c0_i32, %c0_i32_0 : i32, i32
  }
  func.func @transform_5(%arg0: i32, %arg1: i32) -> (i32, i32) {
    %c0_i32 = arith.constant 0 : i32
    %c0_i32_0 = arith.constant 0 : i32
    %c0_i32_1 = arith.constant 0 : i32
    return %c0_i32, %c0_i32_0 : i32, i32
  }
  func.func @transform_6(%arg0: i32, %arg1: i32) -> (i32, i32) {
    %c0_i32 = arith.constant 0 : i32
    %c0_i32_0 = arith.constant 0 : i32
    %c0_i32_1 = arith.constant 0 : i32
    return %c0_i32, %c0_i32_0 : i32, i32
  }
  func.func @transform_7(%arg0: i32, %arg1: i32) -> (i32, i32) {
    %c0_i32 = arith.constant 0 : i32
    %c0_i32_0 = arith.constant 0 : i32
    %c0_i32_1 = arith.constant 0 : i32
    return %c0_i32, %c0_i32_0 : i32, i32
  }
  func.func @transform_8(%arg0: i32, %arg1: i32) -> (i32, i32) {
    %c0_i32 = arith.constant 0 : i32
    %c0_i32_0 = arith.constant 0 : i32
    %c0_i32_1 = arith.constant 0 : i32
    return %c0_i32, %c0_i32_0 : i32, i32
  }
  func.func @transform_9(%arg0: i32, %arg1: i32) -> (i32, i32) {
    %c0_i32 = arith.constant 0 : i32
    %c0_i32_0 = arith.constant 0 : i32
    %c0_i32_1 = arith.constant 0 : i32
    return %c0_i32, %c0_i32_0 : i32, i32
  }
  func.func @transform_10(%arg0: i32, %arg1: i32) -> (i32, i32) {
    %c0_i32 = arith.constant 0 : i32
    %c0_i32_0 = arith.constant 0 : i32
    %c0_i32_1 = arith.constant 0 : i32
    return %c0_i32, %c0_i32_0 : i32, i32
  }
  func.func @transform_11(%arg0: i32, %arg1: i32) -> (i32, i32, i32) {
    %c0_i32 = arith.constant 0 : i32
    %c0_i32_0 = arith.constant 0 : i32
    return %arg0, %c0_i32, %arg1 : i32, i32, i32
  }
  func.func @transform_12(%arg0: i32, %arg1: i32) -> (i32, i32, i32) {
    %c0_i32 = arith.constant 0 : i32
    %c0_i32_0 = arith.constant 0 : i32
    return %arg0, %c0_i32, %arg1 : i32, i32, i32
  }
  func.func @transform_13(%arg0: i32, %arg1: i32) -> (i32, i32, i32) {
    %c0_i32 = arith.constant 0 : i32
    %c0_i32_0 = arith.constant 0 : i32
    return %arg0, %c0_i32, %arg1 : i32, i32, i32
  }
}

module attributes {stable_mosaic.version = 11 : i64} {
  func.func @_season_mix_kernel(%arg0: i32, %arg1: i32, %arg2: memref<1x8x16xf32, #tpu.memory_space<vmem>>, %arg3: memref<1x8x8xf32, #tpu.memory_space<vmem>>, %arg4: memref<1x8x4xf32, #tpu.memory_space<vmem>>, %arg5: memref<8x16xf32, #tpu.memory_space<vmem>>, %arg6: memref<8x1xf32, #tpu.memory_space<vmem>>, %arg7: memref<8x8xf32, #tpu.memory_space<vmem>>, %arg8: memref<8x1xf32, #tpu.memory_space<vmem>>, %arg9: memref<4x8xf32, #tpu.memory_space<vmem>>, %arg10: memref<4x1xf32, #tpu.memory_space<vmem>>, %arg11: memref<4x4xf32, #tpu.memory_space<vmem>>, %arg12: memref<4x1xf32, #tpu.memory_space<vmem>>, %arg13: memref<1x16x8xf32, #tpu.memory_space<vmem>>, %arg14: memref<1x8x8xf32, #tpu.memory_space<vmem>>, %arg15: memref<1x4x8xf32, #tpu.memory_space<vmem>>) attributes {dimension_semantics = [#tpu.dimension_semantics<parallel>, #tpu.dimension_semantics<parallel>], iteration_bounds = array<i64: 2, 1>, scalar_prefetch = 0 : i64, scratch_operands = 0 : i64, tpu.core_type = #tpu.core_type<tc>, window_params = [{transform_indices = @transform_0, window_bounds = array<i64: 1, 8, 16>}, {transform_indices = @transform_1, window_bounds = array<i64: 1, 8, 8>}, {transform_indices = @transform_2, window_bounds = array<i64: 1, 8, 4>}, {pipeline_mode = #tpu.pipeline_mode<synchronous>, transform_indices = @transform_3, window_bounds = array<i64: 8, 16>}, {pipeline_mode = #tpu.pipeline_mode<synchronous>, transform_indices = @transform_4, window_bounds = array<i64: 8, 1>}, {pipeline_mode = #tpu.pipeline_mode<synchronous>, transform_indices = @transform_5, window_bounds = array<i64: 8, 8>}, {pipeline_mode = #tpu.pipeline_mode<synchronous>, transform_indices = @transform_6, window_bounds = array<i64: 8, 1>}, {pipeline_mode = #tpu.pipeline_mode<synchronous>, transform_indices = @transform_7, window_bounds = array<i64: 4, 8>}, {pipeline_mode = #tpu.pipeline_mode<synchronous>, transform_indices = @transform_8, window_bounds = array<i64: 4, 1>}, {pipeline_mode = #tpu.pipeline_mode<synchronous>, transform_indices = @transform_9, window_bounds = array<i64: 4, 4>}, {pipeline_mode = #tpu.pipeline_mode<synchronous>, transform_indices = @transform_10, window_bounds = array<i64: 4, 1>}, {transform_indices = @transform_11, window_bounds = array<i64: 1, 16, 8>}, {transform_indices = @transform_12, window_bounds = array<i64: 1, 8, 8>}, {transform_indices = @transform_13, window_bounds = array<i64: 1, 4, 8>}]} {
    %c0 = arith.constant 0 : index
    %c0_0 = arith.constant 0 : index
    %c0_1 = arith.constant 0 : index
    %0 = vector.load %arg2[%c0, %c0_0, %c0_1] : memref<1x8x16xf32, #tpu.memory_space<vmem>>, vector<1x8x16xf32>
    %1 = vector.shape_cast %0 : vector<1x8x16xf32> to vector<8x16xf32>
    %2 = tpu.transpose %1, [1, 0] : vector<8x16xf32> -> vector<16x8xf32>
    %c0_2 = arith.constant 0 : index
    %c0_3 = arith.constant 0 : index
    %c0_4 = arith.constant 0 : index
    %3 = vector.load %arg13[%c0_2, %c0_3, %c0_4] : memref<1x16x8xf32, #tpu.memory_space<vmem>>, vector<1x16x8xf32>
    %4 = vector.shape_cast %3 : vector<1x16x8xf32> to vector<16x8xf32>
    %5 = vector.shape_cast %2 : vector<16x8xf32> to vector<1x16x8xf32>
    tpu.vector_store %arg13[%c0_2, %c0_3, %c0_4], %5 {strides = array<i32>} : memref<1x16x8xf32, #tpu.memory_space<vmem>>, vector<1x16x8xf32>,
    %c0_5 = arith.constant 0 : index
    %c0_6 = arith.constant 0 : index
    %c0_7 = arith.constant 0 : index
    %6 = vector.load %arg3[%c0_5, %c0_6, %c0_7] : memref<1x8x8xf32, #tpu.memory_space<vmem>>, vector<1x8x8xf32>
    %7 = vector.shape_cast %6 : vector<1x8x8xf32> to vector<8x8xf32>
    %8 = tpu.transpose %7, [1, 0] : vector<8x8xf32> -> vector<8x8xf32>
    %c0_8 = arith.constant 0 : index
    %c0_9 = arith.constant 0 : index
    %9 = vector.load %arg5[%c0_8, %c0_9] : memref<8x16xf32, #tpu.memory_space<vmem>>, vector<8x16xf32>
    %c0_10 = arith.constant 0 : index
    %c0_11 = arith.constant 0 : index
    %10 = vector.load %arg6[%c0_10, %c0_11] : memref<8x1xf32, #tpu.memory_space<vmem>>, vector<8x1xf32>
    %c0_12 = arith.constant 0 : index
    %c0_13 = arith.constant 0 : index
    %11 = vector.load %arg7[%c0_12, %c0_13] : memref<8x8xf32, #tpu.memory_space<vmem>>, vector<8x8xf32>
    %c0_14 = arith.constant 0 : index
    %c0_15 = arith.constant 0 : index
    %12 = vector.load %arg8[%c0_14, %c0_15] : memref<8x1xf32, #tpu.memory_space<vmem>>, vector<8x1xf32>
    %cst = arith.constant dense<0.000000e+00> : vector<8x8xf32>
    %13 = tpu.matmul %9, %2, %cst {dimension_numbers = #tpu.dot_dimension_numbers<[1], [0], [0], [1], [0, 0, 1, 1], [], []>} : vector<8x16xf32>, vector<16x8xf32>, vector<8x8xf32> -> vector<8x8xf32>
    %14 = vector.broadcast %10 : vector<8x1xf32> to vector<8x8xf32>
    %15 = arith.addf %13, %14 : vector<8x8xf32>
    %cst_16 = arith.constant 5.000000e-01 : f32
    %16 = vector.broadcast %cst_16 : f32 to vector<8x8xf32>
    %17 = arith.mulf %16, %15 : vector<8x8xf32>
    %cst_17 = arith.constant 0.707106769 : f32
    %18 = vector.broadcast %cst_17 : f32 to vector<8x8xf32>
    %19 = arith.mulf %15, %18 : vector<8x8xf32>
    %20 = math.erf %19 : vector<8x8xf32>
    %cst_18 = arith.constant 1.000000e+00 : f32
    %21 = vector.broadcast %cst_18 : f32 to vector<8x8xf32>
    %22 = arith.addf %21, %20 : vector<8x8xf32>
    %23 = arith.mulf %17, %22 : vector<8x8xf32>
    %cst_19 = arith.constant dense<0.000000e+00> : vector<8x8xf32>
    %24 = tpu.matmul %11, %23, %cst_19 {dimension_numbers = #tpu.dot_dimension_numbers<[1], [0], [0], [1], [0, 0, 1, 1], [], []>} : vector<8x8xf32>, vector<8x8xf32>, vector<8x8xf32> -> vector<8x8xf32>
    %25 = vector.broadcast %12 : vector<8x1xf32> to vector<8x8xf32>
    %26 = arith.addf %24, %25 : vector<8x8xf32>
    %27 = arith.addf %8, %26 : vector<8x8xf32>
    %c0_20 = arith.constant 0 : index
    %c0_21 = arith.constant 0 : index
    %c0_22 = arith.constant 0 : index
    %28 = vector.load %arg4[%c0_20, %c0_21, %c0_22] : memref<1x8x4xf32, #tpu.memory_space<vmem>>, vector<1x8x4xf32>
    %29 = vector.shape_cast %28 : vector<1x8x4xf32> to vector<8x4xf32>
    %30 = tpu.transpose %29, [1, 0] : vector<8x4xf32> -> vector<4x8xf32>
    %c0_23 = arith.constant 0 : index
    %c0_24 = arith.constant 0 : index
    %c0_25 = arith.constant 0 : index
    %31 = vector.load %arg14[%c0_23, %c0_24, %c0_25] : memref<1x8x8xf32, #tpu.memory_space<vmem>>, vector<1x8x8xf32>
    %32 = vector.shape_cast %31 : vector<1x8x8xf32> to vector<8x8xf32>
    %33 = vector.shape_cast %27 : vector<8x8xf32> to vector<1x8x8xf32>
    tpu.vector_store %arg14[%c0_23, %c0_24, %c0_25], %33 {strides = array<i32>} : memref<1x8x8xf32, #tpu.memory_space<vmem>>, vector<1x8x8xf32>,
    %c0_26 = arith.constant 0 : index
    %c0_27 = arith.constant 0 : index
    %34 = vector.load %arg9[%c0_26, %c0_27] : memref<4x8xf32, #tpu.memory_space<vmem>>, vector<4x8xf32>
    %c0_28 = arith.constant 0 : index
    %c0_29 = arith.constant 0 : index
    %35 = vector.load %arg10[%c0_28, %c0_29] : memref<4x1xf32, #tpu.memory_space<vmem>>, vector<4x1xf32>
    %c0_30 = arith.constant 0 : index
    %c0_31 = arith.constant 0 : index
    %36 = vector.load %arg11[%c0_30, %c0_31] : memref<4x4xf32, #tpu.memory_space<vmem>>, vector<4x4xf32>
    %c0_32 = arith.constant 0 : index
    %c0_33 = arith.constant 0 : index
    %37 = vector.load %arg12[%c0_32, %c0_33] : memref<4x1xf32, #tpu.memory_space<vmem>>, vector<4x1xf32>
    %cst_34 = arith.constant dense<0.000000e+00> : vector<4x8xf32>
    %38 = tpu.matmul %34, %27, %cst_34 {dimension_numbers = #tpu.dot_dimension_numbers<[1], [0], [0], [1], [0, 0, 1, 1], [], []>} : vector<4x8xf32>, vector<8x8xf32>, vector<4x8xf32> -> vector<4x8xf32>
    %39 = vector.broadcast %35 : vector<4x1xf32> to vector<4x8xf32>
    %40 = arith.addf %38, %39 : vector<4x8xf32>
    %cst_35 = arith.constant 5.000000e-01 : f32
    %41 = vector.broadcast %cst_35 : f32 to vector<4x8xf32>
    %42 = arith.mulf %41, %40 : vector<4x8xf32>
    %cst_36 = arith.constant 0.707106769 : f32
    %43 = vector.broadcast %cst_36 : f32 to vector<4x8xf32>
    %44 = arith.mulf %40, %43 : vector<4x8xf32>
    %45 = math.erf %44 : vector<4x8xf32>
    %cst_37 = arith.constant 1.000000e+00 : f32
    %46 = vector.broadcast %cst_37 : f32 to vector<4x8xf32>
    %47 = arith.addf %46, %45 : vector<4x8xf32>
    %48 = arith.mulf %42, %47 : vector<4x8xf32>
    %cst_38 = arith.constant dense<0.000000e+00> : vector<4x8xf32>
    %49 = tpu.matmul %36, %48, %cst_38 {dimension_numbers = #tpu.dot_dimension_numbers<[1], [0], [0], [1], [0, 0, 1, 1], [], []>} : vector<4x4xf32>, vector<4x8xf32>, vector<4x8xf32> -> vector<4x8xf32>
    %50 = vector.broadcast %37 : vector<4x1xf32> to vector<4x8xf32>
    %51 = arith.addf %49, %50 : vector<4x8xf32>
    %52 = arith.addf %30, %51 : vector<4x8xf32>
    %c0_39 = arith.constant 0 : index
    %c0_40 = arith.constant 0 : index
    %c0_41 = arith.constant 0 : index
    %53 = vector.load %arg15[%c0_39, %c0_40, %c0_41] : memref<1x4x8xf32, #tpu.memory_space<vmem>>, vector<1x4x8xf32>
    %54 = vector.shape_cast %53 : vector<1x4x8xf32> to vector<4x8xf32>
    %55 = vector.shape_cast %52 : vector<4x8xf32> to vector<1x4x8xf32>
    tpu.vector_store %arg15[%c0_39, %c0_40, %c0_41], %55 {strides = array<i32>} : memref<1x4x8xf32, #tpu.memory_space<vmem>>, vector<1x4x8xf32>,
    return
  }
  func.func @transform_0(%arg0: i32, %arg1: i32) -> (i32, i32, i32) {
    %c0_i32 = arith.constant 0 : i32
    %c0_i32_0 = arith.constant 0 : i32
    return %arg0, %arg1, %c0_i32 : i32, i32, i32
  }
  func.func @transform_1(%arg0: i32, %arg1: i32) -> (i32, i32, i32) {
    %c0_i32 = arith.constant 0 : i32
    %c0_i32_0 = arith.constant 0 : i32
    return %arg0, %arg1, %c0_i32 : i32, i32, i32
  }
  func.func @transform_2(%arg0: i32, %arg1: i32) -> (i32, i32, i32) {
    %c0_i32 = arith.constant 0 : i32
    %c0_i32_0 = arith.constant 0 : i32
    return %arg0, %arg1, %c0_i32 : i32, i32, i32
  }
  func.func @transform_3(%arg0: i32, %arg1: i32) -> (i32, i32) {
    %c0_i32 = arith.constant 0 : i32
    %c0_i32_0 = arith.constant 0 : i32
    %c0_i32_1 = arith.constant 0 : i32
    return %c0_i32, %c0_i32_0 : i32, i32
  }
  func.func @transform_4(%arg0: i32, %arg1: i32) -> (i32, i32) {
    %c0_i32 = arith.constant 0 : i32
    %c0_i32_0 = arith.constant 0 : i32
    %c0_i32_1 = arith.constant 0 : i32
    return %c0_i32, %c0_i32_0 : i32, i32
  }
  func.func @transform_5(%arg0: i32, %arg1: i32) -> (i32, i32) {
    %c0_i32 = arith.constant 0 : i32
    %c0_i32_0 = arith.constant 0 : i32
    %c0_i32_1 = arith.constant 0 : i32
    return %c0_i32, %c0_i32_0 : i32, i32
  }
  func.func @transform_6(%arg0: i32, %arg1: i32) -> (i32, i32) {
    %c0_i32 = arith.constant 0 : i32
    %c0_i32_0 = arith.constant 0 : i32
    %c0_i32_1 = arith.constant 0 : i32
    return %c0_i32, %c0_i32_0 : i32, i32
  }
  func.func @transform_7(%arg0: i32, %arg1: i32) -> (i32, i32) {
    %c0_i32 = arith.constant 0 : i32
    %c0_i32_0 = arith.constant 0 : i32
    %c0_i32_1 = arith.constant 0 : i32
    return %c0_i32, %c0_i32_0 : i32, i32
  }
  func.func @transform_8(%arg0: i32, %arg1: i32) -> (i32, i32) {
    %c0_i32 = arith.constant 0 : i32
    %c0_i32_0 = arith.constant 0 : i32
    %c0_i32_1 = arith.constant 0 : i32
    return %c0_i32, %c0_i32_0 : i32, i32
  }
  func.func @transform_9(%arg0: i32, %arg1: i32) -> (i32, i32) {
    %c0_i32 = arith.constant 0 : i32
    %c0_i32_0 = arith.constant 0 : i32
    %c0_i32_1 = arith.constant 0 : i32
    return %c0_i32, %c0_i32_0 : i32, i32
  }
  func.func @transform_10(%arg0: i32, %arg1: i32) -> (i32, i32) {
    %c0_i32 = arith.constant 0 : i32
    %c0_i32_0 = arith.constant 0 : i32
    %c0_i32_1 = arith.constant 0 : i32
    return %c0_i32, %c0_i32_0 : i32, i32
  }
  func.func @transform_11(%arg0: i32, %arg1: i32) -> (i32, i32, i32) {
    %c0_i32 = arith.constant 0 : i32
    %c0_i32_0 = arith.constant 0 : i32
    return %arg0, %c0_i32, %arg1 : i32, i32, i32
  }
  func.func @transform_12(%arg0: i32, %arg1: i32) -> (i32, i32, i32) {
    %c0_i32 = arith.constant 0 : i32
    %c0_i32_0 = arith.constant 0 : i32
    return %arg0, %c0_i32, %arg1 : i32, i32, i32
  }
  func.func @transform_13(%arg0: i32, %arg1: i32) -> (i32, i32, i32) {
    %c0_i32 = arith.constant 0 : i32
    %c0_i32_0 = arith.constant 0 : i32
    return %arg0, %c0_i32, %arg1 : i32, i32, i32
  }
}

</mosaic_0001>

<bundles_post_ra>
// kernel: tpu_custom_call.1
= control target key start
LH: loop header
LB: loop body
LE: loop exit
PB: predicated region body
PF: predicated region fallthrough
CT: control target
= control target key end

     0   :  { %s1712_s0 = inlined_call_operand.vmem [shape: f32[2,8,16], index: 0, kind: input, shape index: {}]   ;;  %s1713_s1 = inlined_call_operand.vmem [shape: f32[2,8,8], index: 1, kind: input, shape index: {}]   ;;  %s1714_s2 = inlined_call_operand.vmem [shape: f32[2,8,4], index: 2, kind: input, shape index: {}]   ;;  %s1715_s3 = inlined_call_operand.vmem [shape: f32[8,16], index: 3, kind: input, shape index: {}]   ;;  %s1716_s4 = inlined_call_operand.vmem [shape: f32[8,1], index: 4, kind: input, shape index: {}]   ;;  %s1717_s5 = inlined_call_operand.vmem [shape: f32[8,8], index: 5, kind: input, shape index: {}]   ;;  %s1718_s6 = inlined_call_operand.vmem [shape: f32[8,1], index: 6, kind: input, shape index: {}]   ;;  %s1719_s7 = inlined_call_operand.vmem [shape: f32[4,8], index: 7, kind: input, shape index: {}]   ;;  %s1720_s8 = inlined_call_operand.vmem [shape: f32[4,1], index: 8, kind: input, shape index: {}]   ;;  %s1721_s9 = inlined_call_operand.vmem [shape: f32[4,4], index: 9, kind: input, shape index: {}]   ;;  %s1722_s10 = inlined_call_operand.vmem [shape: f32[4,1], index: 10, kind: input, shape index: {}]   ;;  %s1723_s11 = inlined_call_operand.vmem [shape: f32[2,16,8], index: 11, kind: output, shape index: {0}]   ;;  %s1724_s12 = inlined_call_operand.hbm [shape: f32[2,8,8], index: 12, kind: output, shape index: {1}]   ;;  %s1725_s13 = inlined_call_operand.hbm [shape: f32[2,4,8], index: 13, kind: output, shape index: {2}]  }
   0x1   :  { %1728 = sst [smem:[#allocation11_spill]] %s1712_s0 }
   0x2   :  { %1729 = sst [smem:[#allocation12_spill]] %s1713_s1 }
   0x3   :  { %19 = vsyncpa [#allocation3], 0 }
   0x4   :  { %21 = vsyncpa [#allocation3 + $0x1], 0 }
   0x5   :  { %22 = vsyncpa [#allocation5], 0 }
   0x6   :  { %24 = vsyncpa [#allocation5 + $0x1], 0  ;;  %s1524_s25 = smov 0   ;;  %s1526_s26 = smov 0  }
   0x7   :  { %s1528_s27 = smov 0   ;;  %s1530_s28 = smov 0  }
   0x8   :  { %s1532_s29 = smov 0   ;;  %s1534_s30 = smov 0  }
   0x9 LB: > { %1730 = sst [smem:[#allocation8_spill]] %s1442_s29  ;;  %s1208_s14 = sadd.s32 4294967295, %s1446_s30   ;;  %s1446_s30 = sphi %s1534_s30, %s30_s30   ;;  %s1442_s29 = sphi %s1532_s29, %s1739_s29   ;;  %s1438_s28 = sphi %s1530_s28, %s1738_s28   ;;  %s1434_s27 = sphi %s1528_s27, %s1742_s27   ;;  %s1430_s26 = sphi %s1526_s26, %s1741_s26   ;;  %s1426_s25 = sphi %s1524_s25, %s1740_s25  }
   0xa   : > { %s1209_s15 = sadd.s32 4294967294, %s1446_s30   ;;  %s42_s16 = sadd.s32 1, %s1442_s29 }
   0xb   : > { %s331_s17 = sadd.s32 1, %s1434_s27  ;;  %p44_p0 = scmp.ge.s32.totalorder %s42_s16, 2 }
   0xc   : > { %p341_p1 = scmp.ne.s32.totalorder %s1434_s27, %s1430_s26  ;;  %p342_p2 = scmp.eq.s32.totalorder %s1208_s14, 1 }
   0xd   : > { %p347_p3 = scmp.ne.s32.totalorder %s1430_s26, %s1426_s25  ;;  %s1744_s16 = smov (%p44_p0, %s42_s16), 0 }
   0xe   : > { %1731 = sst [smem:[#allocation9_spill]] %s1744_s16  ;;  %p1564_p4 = por %p342_p2, %p341_p1 }
   0xf   : > { %p348_p5 = scmp.eq.s32.totalorder %s1209_s15, 1  ;;  %s326_s19 = ssub.s32 %s1442_s29, %s1744_s16 }
  0x10   : > { %p1212_p6 = scmp.ge.s32.totalorder %s1446_s30, 1  ;;  %p329_p7 = scmp.eq.s32.totalorder %s326_s19, 0 }
  0x11   : > { %p1571_p8 = por %p348_p5, %p347_p3  ;;  %p448_p9 = scmp.lt.s32.totalorder %s1446_s30, 3 }
  0x12   : > { %s1577_s21 = scalar_select %p329_p7, %s1434_s27, %s331_s17  }
  0x13   : > { %p449_p10 = pnand %p1212_p6, %p448_p9 }
  0x14   : > { %1734 = sst [smem:[#allocation10_spill]] %s1577_s21  ;;  %p521_p11 = scmp.lt.s32.totalorder (!%p449_p10), %s1438_s28, 1  ;;  %v1448_v1 = vmov (!%p449_p10), 0.0|0.0   ;;  %vm1449_vm0 = vmmov (!%p449_p10), 0   ;;  %v1450_v2 = vmov (!%p449_p10), 0.0   ;;  %v622_v3 = vld [vmem:[%s1718_s6] sm:$0xff] (!%p449_p10) }
  0x15   : > { %452 = sbr.rel (%p449_p10) target bundleno = 1082 (0x43a), region = 64  ;;  %s1735_s0 = sld [smem:[#allocation11_spill]] (!%p449_p10)  ;;  %1263 = vmatprep.subr.bf16.mxu0 (!%p449_p10), %v1448_v1  ;;  %1245 = vmatprep.mubr.msk.f32.mxu0 (!%p449_p10), %vm1449_vm0, %v1450_v2  ;;  %v1451_v4 = vmov (!%p449_p10), 0   ;;  %v620_v5 = vld [vmem:[%s1716_s4] sm:$0xff] (!%p449_p10)  ;;  %vm583_vm1 = vcmask (!%p449_p10), 64512   ;;  %vm628_vm2 = vcmask (!%p449_p10), 130048  }
  0x16   : > { %1248 = vmatprep.subr.mxu1 (!%p449_p10), %v1450_v2  ;;  %1250 = vmatprep.mubr.msk.f32.mxu1 (!%p449_p10), %vm1449_vm0, %v1450_v2  ;;  %v823_v6 = vld [vmem:[%s1722_s10] sm:$0xf] (!%p449_p10)  ;;  %s1736_s1 = sld [smem:[#allocation12_spill]] (!%p449_p10)  ;;  %vm916_vm3 = vcmask (!%p449_p10), 1043456   ;;  %vm912_vm4 = vcmask (!%p449_p10), 31744  }
  0x17   : > { %1331 = vset.pattern.permute.xlu1 (!%p449_p10), %v1451_v4  ;;  %v619_v10 = vld [vmem:[%s1715_s3] sm:$0xff] (!%p449_p10) }
  0x18   : > { %709 = vperm.xlu1 (!%p449_p10), %1331, %v622_v3   ;;  %v821_v12 = vld [vmem:[%s1720_s8] sm:$0xf] (!%p449_p10) }
  0x19   : > { %v621_v22 = vld [vmem:[%s1717_s5] sm:$0xff] (!%p449_p10) }
  0x1a   : > { %v820_v29 = vld [vmem:[%s1719_s7] sm:$0xf] (!%p449_p10) }
  0x1b   : > { %v822_v40 = vld [vmem:[%s1721_s9] sm:$0xf] (!%p449_p10) }
  0x1c   : > { %s522_s22 = scalar_select %p521_p11, %s1438_s28, 1 }
  0x1e   : > { %s1581_s23 = sshll.u32 %s522_s22, 3  ;;  %s1231_s16 = sshll.u32 %s522_s22, 4 }
  0x1f   : > { %s527_s15 = scalar_lea.vmem %s1735_s0, %s1581_s23  ;;  %s549_s17 = scalar_lea.vmem %s1723_s11, %s1231_s16 }
  0x20   : > { %v550_v0 = vld [vmem:[%s527_s15] sm:$0xff]  ;;  %s534_s16 = scalar_lea.vmem %s1736_s1, %s1581_s23  ;;  %s541_s22 = scalar_lea.vmem %s1714_s2, %s1581_s23 }
  0x21   : > { %551 = vxpose.xlu0.b32.start.end [1/1] (short) (narrow) %v550_v0, 16  ;;  %v586_v11 = vld [vmem:[%s534_s16] sm:$0xff]  ;;  %s1227_s23 = sshll.u32 %s1438_s28, 7  ;;  %s1452_s1 = smov [#allocation2]  }
  0x22   : > { %v786_v30 = vld [vmem:[%s541_s22] sm:$0xff]  ;;  %s1639_s0 = scalar_lea.hbm %s1724_s12, %s1227_s23  ;;  %s1340_s14 = sshll.u32 %s1452_s1, 4  ;;  %s1341_s14 = int_to_ptr.vmem [resolvable:$false] %s1340_s14 }
  0x23   : > { %s1342_s15 = scalar_lea.vmem %s1341_s14, 256 }
  0x41   : > { %587 = vxpose.xlu1.b32.start.end [1/1] (short) (narrow) %v586_v11, 8 }
  0x4a   : > { %1330 = vset.pattern.permute.xlu0 %v1451_v4 }
  0x4e   : > { %625 = vperm.xlu0 %1330, %v620_v5  }
  0x52   : > { %909 = vperm.xlu0 %1330, %v823_v6  }
  0x5f   : > { %826 = vperm.xlu1 %1331, %v821_v12  }
  0x70   : > { %787 = vxpose.xlu0.b32.start.end [1/1] (short) (narrow) %v786_v30, 8 }
  0x97   : > { %v710_v23 = vpop.permute.xlu1 %709 }
  0xa1   : > { %v567_v7 = vpop.trf.xlu0 }
  0xa2   : > { %584 = vst.msk [vmem:[%s549_s17] sm:$0xff] %vm583_vm1, %v567_v7 }
  0xa5   : > { %v568_v8 = vpop.trf.xlu0 }
  0xa6   : > { %585 = vst.msk [vmem:[%s549_s17 + $0x8] sm:$0xff] %vm583_vm1, %v568_v8  ;;  %v1264_v9 = vpack.c.bf16 %v568_v8, %v567_v7  ;;  %s1620_s17 = sand.u32 1, %s1430_s26  }
  0xa7   : > { %s1213_s19 = sshll.u32 %s1620_s17, 3  ;;  %s1002_s21 = scalar_lea.sflag [#allocation3], %s1620_s17 }
  0xa8   : > { %1265 = vmatpush3.bf16.msra.mxu0 %v1264_v9  ;;  %s513_s29 = scalar_lea.vmem [#allocation2], %s1213_s19 }
  0xa9   : > { %1258 = vmatprep.subr.mxu0 %v1450_v2  ;;  %s1024_s16 = sshll.u32 %s513_s29, 4  ;;  %s1025_s16 = int_to_ptr.vmem [resolvable:$true] %s1024_s16 }
  0xaa   : > { %s1336_s22 = scalar_lea.vmem %s1025_s16, 128  ;;  %p1343_p1 = scmp.lt.s32.totalorder %s1025_s16, %s1341_s14 }
  0xab   : > { %1246 = vmatmul.mubr.msk.f32.vlgmr.msra.gmra.mrb[0].mxu0 %vm628_vm2, %v619_v10  ;;  %p1337_p12 = scmp.ne.s32.totalorder %s1025_s16, %s1336_s22  ;;  %p1344_p2 = scmp.lt.s32.totalorder %s1342_s15, %s1336_s22 }
  0xac   : > { %1260 = vmatprep.mubr.msk.f32.mxu0 %vm1449_vm0, %v1450_v2 }
  0xad   : > { %p1338_p13 = pnand %p1337_p12, %p1564_p4  ;;  %p1345_p3 = por %p1344_p2, %p1343_p1 }
  0xaf   : > { %p1339_p0 = pneg %p1338_p13 }
  0xb1   : > { %p1346_p5 = pnand %p1345_p3, %p1339_p0 }
  0xc1   : > { %v603_v27 = vpop.trf.xlu1 }
  0xcd   : > { %v626_v13 = vpop.permute.xlu0 %625 }
  0xde   : > { %v827_v31 = vpop.permute.xlu1 %826 }
 0x17e   : > { %v698_v14 = vpop.f32.mrb[0].mxu0 }
 0x17f   : > { %v699_v15 = vadd.f32 %v698_v14, %v626_v13  ;;  %v1247_v16 = vpop.f32.mrb[1].mxu0 }
 0x181   : > { %v703_v17 = vmul.f32 0.70710677, %v699_v15  ;;  %v702_v19 = vmul.f32 0.5, %v699_v15 }
 0x183   : > { %1332 = verf.f32 %v703_v17 }
 0x18d   : > { %v1333_v18 = vpop.eup %1332 }
 0x18e   : > { %v705_v20 = vadd.f32 1.0, %v1333_v18 }
 0x190   : > { %v706_v21 = vmul.f32 %v705_v20, %v702_v19 }
 0x192   : > { %1249 = vmatpush3.msra.mxu1 %v706_v21 }
 0x193   : > { %1251 = vmatmul.mubr.msk.f32.vlgmr.msra.gmra.mrb[0].mxu1 %vm583_vm1, %v621_v22  ;;  %1253 = vmatprep.subr.mxu1 %v1450_v2 }
 0x194   : > { %1255 = vmatprep.mubr.msk.f32.mxu1 %vm1449_vm0, %v1450_v2 }
 0x266   : > { %v781_v24 = vpop.f32.mrb[0].mxu1 }
 0x267   : > { %v782_v25 = vadd.f32 %v781_v24, %v710_v23  ;;  %v1252_v26 = vpop.f32.mrb[1].mxu1 }
 0x269   : > { %v785_v28 = vadd.f32 %v782_v25, %v603_v27 }
 0x26b   : > { %1254 = vmatpush3.msra.mxu1 %v785_v28  ;;  %819 = vst.msk [vmem:[%s513_s29] sm:$0xff] %vm583_vm1, %v785_v28 }
 0x26c   : > { %1256 = vmatmul.mubr.msk.f32.vlgmr.msra.gmra.mrb[2].mxu1 %vm583_vm1, %v820_v29 }
 0x33f   : > { %v898_v32 = vpop.f32.mrb[2].mxu1 }
 0x340   : > { %v899_v33 = vadd.f32 %v898_v32, %v827_v31  ;;  %v1257_v34 = vpop.f32.mrb[3].mxu1 }
 0x342   : > { %v903_v35 = vmul.f32 0.70710677, %v899_v33  ;;  %v902_v37 = vmul.f32 0.5, %v899_v33 }
 0x344   : > { %1334 = verf.f32 %v903_v35 }
 0x34e   : > { %v1335_v36 = vpop.eup %1334 }
 0x34f   : > { %v905_v38 = vadd.f32 1.0, %v1335_v36 }
 0x351   : > { %v906_v39 = vmul.f32 %v905_v38, %v902_v37 }
 0x353   : > { %1259 = vmatpush3.msk.msra.mxu0 %vm916_vm3, %v906_v39 }
 0x354   : > { %1261 = vmatmul.mubr.msk.f32.vlgmr.msra.gmra.mrb[2].mxu0 %vm912_vm4, %v822_v40 }
 0x355   : > { %1349 = shalt.err (!%p1346_p5)
}
 0x356   : > { %s1350_s29 = scalar_lea.hbm %s1639_s0, 128  ;;  %s1354_s1 = scalar_lea.hbm %s1724_s12, 256 }
 0x357   : > { %p1351_p6 = scmp.ne.s32.totalorder %s1639_s0, %s1350_s29  ;;  %p1355_p10 = scmp.lt.u32.totalorder %s1639_s0, %s1724_s12 }
 0x358   : > { %p1356_p11 = scmp.lt.u32.totalorder %s1354_s1, %s1350_s29  ;;  %p1358_p13 = scmp.lt.u32.totalorder %s1350_s29, %s1639_s0 }
 0x359   : > { %p1352_p7 = pnand %p1351_p6, %p1564_p4 }
 0x35a   : > { %p1357_p12 = por %p1356_p11, %p1355_p10 }
 0x35b   : > { %p1353_p9 = pneg %p1352_p7 }
 0x35c   : > { %p1359_p0 = por %p1358_p13, %p1357_p12 }
 0x35e   : > { %p1360_p1 = pnand %p1359_p0, %p1353_p9 }
 0x360   : > { %1363 = shalt.err (!%p1360_p1)
}
 0x361   : > { %1266 = dma.vmem_to_hbm [thread:$0]  (%p1564_p4), %s1025_s16, 128, %s1639_s0, %s1002_s21   ;;  %v910_v41 = vpop.permute.xlu0 %909  ;;  %vm991_vm5 = vcmask 60416  }
 0x362   : > { %s1214_s22 = sshll.u32 %s1620_s17, 2  ;;  %s1228_s15 = sshll.u32 %s1438_s28, 6 }
 0x363   : > { %s520_s23 = scalar_lea.vmem [#allocation4], %s1214_s22  ;;  %s1664_s24 = scalar_lea.hbm %s1725_s13, %s1228_s15 }
 0x364   : > { %s1038_s19 = sshll.u32 %s520_s23, 4  ;;  %s1007_s0 = scalar_lea.sflag [#allocation5], %s1620_s17  ;;  %s1666_s19 = int_to_ptr.vmem [resolvable:$true] %s1038_s19 }
 0x365   : > { %v803_v43 = vpop.trf.xlu0  ;;  %s1364_s16 = scalar_lea.vmem %s1666_s19, 64  ;;  %s1453_s28 = smov [#allocation4]  }
 0x366   : > { %p1365_p2 = scmp.ne.s32.totalorder %s1666_s19, %s1364_s16  ;;  %s1368_s21 = sshll.u32 %s1453_s28, 4  ;;  %s1369_s21 = int_to_ptr.vmem [resolvable:$false] %s1368_s21 }
 0x367   : > { %s1370_s14 = scalar_lea.vmem %s1369_s21, 128  ;;  %p1371_p6 = scmp.lt.s32.totalorder %s1666_s19, %s1369_s21 }
 0x368   : > { %p1366_p3 = pnand %p1365_p2, %p1564_p4  ;;  %p1372_p7 = scmp.lt.s32.totalorder %s1370_s14, %s1364_s16 }
 0x36a   : > { %p1367_p5 = pneg %p1366_p3  ;;  %p1373_p9 = por %p1372_p7, %p1371_p6 }
 0x36c   : > { %p1374_p10 = pnand %p1373_p9, %p1367_p5 }
 0x427   : > { %v986_v42 = vpop.f32.mrb[2].mxu0 }
 0x428   : > { %v987_v44 = vadd.f32 %v986_v42, %v910_v41  ;;  %v1262_v45 = vpop.f32.mrb[3].mxu0 }
 0x42a   : > { %v990_v46 = vadd.f32 %v987_v44, %v803_v43 }
 0x42c   : > { %992 = vst.msk [vmem:[%s520_s23] sm:$0xf] %vm991_vm5, %v990_v46 }
 0x42d   : > { %1377 = shalt.err (!%p1374_p10)
}
 0x42e   : > { %s1378_s17 = scalar_lea.hbm %s1664_s24, 64  ;;  %s1382_s23 = scalar_lea.hbm %s1725_s13, 128 }
 0x42f   : > { %p1379_p11 = scmp.ne.s32.totalorder %s1664_s24, %s1378_s17  ;;  %p1383_p0 = scmp.lt.u32.totalorder %s1664_s24, %s1725_s13 }
 0x430   : > { %p1384_p1 = scmp.lt.u32.totalorder %s1382_s23, %s1378_s17  ;;  %p1386_p3 = scmp.lt.u32.totalorder %s1378_s17, %s1664_s24 }
 0x431   : > { %p1380_p12 = pnand %p1379_p11, %p1564_p4 }
 0x432   : > { %p1385_p2 = por %p1384_p1, %p1383_p0 }
 0x433   : > { %p1381_p13 = pneg %p1380_p12 }
 0x434   : > { %p1387_p5 = por %p1386_p3, %p1385_p2 }
 0x436   : > { %p1388_p6 = pnand %p1387_p5, %p1381_p13 }
 0x438   : > { %1391 = shalt.err (!%p1388_p6)
}
 0x439   : > { %1267 = dma.vmem_to_hbm [thread:$0]  (%p1564_p4), %s1666_s19, 64, %s1664_s24, %s1007_s0  }
 0x43a PF: > { %p1277_p7 = scmp.ge.s32.totalorder %s1446_s30, 2  ;;  %s1061_s16 = sand.u32 1, %s1426_s25  }
 0x43b   : > { %s1062_s28 = scalar_lea.sflag [#allocation3], %s1061_s16 }
 0x43c   : > { %p1271_p9 = pnand %p1277_p7, %p1571_p8 }
 0x43e   : > { %1417 = dma.done.wait (!%p1271_p9), %s1062_s28, 128  }
 0x43f   : > { %1419 = vsyncadd (!%p1271_p9), %s1062_s28, 4294967168  ;;  %s1071_s21 = scalar_lea.sflag [#allocation5], %s1061_s16 }
 0x440   : > { %1421 = dma.done.wait (!%p1271_p9), %s1071_s21, 64  }
 0x441   : > { %1423 = vsyncadd (!%p1271_p9), %s1071_s21, 4294967232  ;;  %s30_s30 = sadd.s32 1, %s1446_s30   ;;  %s1737_s18 = sld [smem:[#allocation10_spill]] }
 0x442   : > { %p27_p10 = scmp.ge.s32.totalorder %s30_s30, 4   ;;  %s1738_s28 = sld [smem:[#allocation8_spill]] }
 0x443   : > { %s1739_s29 = sld [smem:[#allocation9_spill]]  ;;  %s1740_s25 = smov %s1430_s26 }
 0x444   : > { %s1741_s26 = smov %s1434_s27  ;;  %29 = sbr.rel (!%p27_p10) target bundleno = 9 (0x9), region = 134 }
 0x447   : > { %s1742_s27 = smov %s1737_s18 }
 0x44b   :  { %1076 = vsyncpa [#allocation3], 1 }
 0x44c   :  { %1078 = vsyncpa [#allocation3 + $0x1], 1 }
 0x44d   :  { %1079 = vsyncpa [#allocation5], 1 }
 0x44e   :  { %1081 = vsyncpa [#allocation5 + $0x1], 1 }

// kernel: tpu_custom_call.1
= control target key start
LH: loop header
LB: loop body
LE: loop exit
PB: predicated region body
PF: predicated region fallthrough
CT: control target
= control target key end

     0   :  { %s1712_s0 = inlined_call_operand.vmem [shape: f32[2,8,16], index: 0, kind: input, shape index: {}]   ;;  %s1713_s1 = inlined_call_operand.vmem [shape: f32[2,8,8], index: 1, kind: input, shape index: {}]   ;;  %s1714_s2 = inlined_call_operand.vmem [shape: f32[2,8,4], index: 2, kind: input, shape index: {}]   ;;  %s1715_s3 = inlined_call_operand.vmem [shape: f32[8,16], index: 3, kind: input, shape index: {}]   ;;  %s1716_s4 = inlined_call_operand.vmem [shape: f32[8,1], index: 4, kind: input, shape index: {}]   ;;  %s1717_s5 = inlined_call_operand.vmem [shape: f32[8,8], index: 5, kind: input, shape index: {}]   ;;  %s1718_s6 = inlined_call_operand.vmem [shape: f32[8,1], index: 6, kind: input, shape index: {}]   ;;  %s1719_s7 = inlined_call_operand.vmem [shape: f32[4,8], index: 7, kind: input, shape index: {}]   ;;  %s1720_s8 = inlined_call_operand.vmem [shape: f32[4,1], index: 8, kind: input, shape index: {}]   ;;  %s1721_s9 = inlined_call_operand.vmem [shape: f32[4,4], index: 9, kind: input, shape index: {}]   ;;  %s1722_s10 = inlined_call_operand.vmem [shape: f32[4,1], index: 10, kind: input, shape index: {}]   ;;  %s1723_s11 = inlined_call_operand.vmem [shape: f32[2,16,8], index: 11, kind: output, shape index: {0}]   ;;  %s1724_s12 = inlined_call_operand.hbm [shape: f32[2,8,8], index: 12, kind: output, shape index: {1}]   ;;  %s1725_s13 = inlined_call_operand.hbm [shape: f32[2,4,8], index: 13, kind: output, shape index: {2}]  }
   0x1   :  { %1728 = sst [smem:[#allocation11_spill]] %s1712_s0 }
   0x2   :  { %1729 = sst [smem:[#allocation12_spill]] %s1713_s1 }
   0x3   :  { %19 = vsyncpa [#allocation3], 0 }
   0x4   :  { %21 = vsyncpa [#allocation3 + $0x1], 0 }
   0x5   :  { %22 = vsyncpa [#allocation5], 0 }
   0x6   :  { %24 = vsyncpa [#allocation5 + $0x1], 0  ;;  %s1524_s25 = smov 0   ;;  %s1526_s26 = smov 0  }
   0x7   :  { %s1528_s27 = smov 0   ;;  %s1530_s28 = smov 0  }
   0x8   :  { %s1532_s29 = smov 0   ;;  %s1534_s30 = smov 0  }
   0x9 LB: > { %1730 = sst [smem:[#allocation8_spill]] %s1442_s29  ;;  %s1208_s14 = sadd.s32 4294967295, %s1446_s30   ;;  %s1446_s30 = sphi %s1534_s30, %s30_s30   ;;  %s1442_s29 = sphi %s1532_s29, %s1739_s29   ;;  %s1438_s28 = sphi %s1530_s28, %s1738_s28   ;;  %s1434_s27 = sphi %s1528_s27, %s1742_s27   ;;  %s1430_s26 = sphi %s1526_s26, %s1741_s26   ;;  %s1426_s25 = sphi %s1524_s25, %s1740_s25  }
   0xa   : > { %s1209_s15 = sadd.s32 4294967294, %s1446_s30   ;;  %s42_s16 = sadd.s32 1, %s1442_s29 }
   0xb   : > { %s331_s17 = sadd.s32 1, %s1434_s27  ;;  %p44_p0 = scmp.ge.s32.totalorder %s42_s16, 2 }
   0xc   : > { %p341_p1 = scmp.ne.s32.totalorder %s1434_s27, %s1430_s26  ;;  %p342_p2 = scmp.eq.s32.totalorder %s1208_s14, 1 }
   0xd   : > { %p347_p3 = scmp.ne.s32.totalorder %s1430_s26, %s1426_s25  ;;  %s1744_s16 = smov (%p44_p0, %s42_s16), 0 }
   0xe   : > { %1731 = sst [smem:[#allocation9_spill]] %s1744_s16  ;;  %p1564_p4 = por %p342_p2, %p341_p1 }
   0xf   : > { %p348_p5 = scmp.eq.s32.totalorder %s1209_s15, 1  ;;  %s326_s19 = ssub.s32 %s1442_s29, %s1744_s16 }
  0x10   : > { %p1212_p6 = scmp.ge.s32.totalorder %s1446_s30, 1  ;;  %p329_p7 = scmp.eq.s32.totalorder %s326_s19, 0 }
  0x11   : > { %p1571_p8 = por %p348_p5, %p347_p3  ;;  %p448_p9 = scmp.lt.s32.totalorder %s1446_s30, 3 }
  0x12   : > { %s1577_s21 = scalar_select %p329_p7, %s1434_s27, %s331_s17  }
  0x13   : > { %p449_p10 = pnand %p1212_p6, %p448_p9 }
  0x14   : > { %1734 = sst [smem:[#allocation10_spill]] %s1577_s21  ;;  %p521_p11 = scmp.lt.s32.totalorder (!%p449_p10), %s1438_s28, 1  ;;  %v1448_v1 = vmov (!%p449_p10), 0.0|0.0   ;;  %vm1449_vm0 = vmmov (!%p449_p10), 0   ;;  %v1450_v2 = vmov (!%p449_p10), 0.0   ;;  %v622_v3 = vld [vmem:[%s1718_s6] sm:$0xff] (!%p449_p10) }
  0x15   : > { %452 = sbr.rel (%p449_p10) target bundleno = 1082 (0x43a), region = 64  ;;  %s1735_s0 = sld [smem:[#allocation11_spill]] (!%p449_p10)  ;;  %1263 = vmatprep.subr.bf16.mxu0 (!%p449_p10), %v1448_v1  ;;  %1245 = vmatprep.mubr.msk.f32.mxu0 (!%p449_p10), %vm1449_vm0, %v1450_v2  ;;  %v1451_v4 = vmov (!%p449_p10), 0   ;;  %v620_v5 = vld [vmem:[%s1716_s4] sm:$0xff] (!%p449_p10)  ;;  %vm583_vm1 = vcmask (!%p449_p10), 64512   ;;  %vm628_vm2 = vcmask (!%p449_p10), 130048  }
  0x16   : > { %1248 = vmatprep.subr.mxu1 (!%p449_p10), %v1450_v2  ;;  %1250 = vmatprep.mubr.msk.f32.mxu1 (!%p449_p10), %vm1449_vm0, %v1450_v2  ;;  %v823_v6 = vld [vmem:[%s1722_s10] sm:$0xf] (!%p449_p10)  ;;  %s1736_s1 = sld [smem:[#allocation12_spill]] (!%p449_p10)  ;;  %vm916_vm3 = vcmask (!%p449_p10), 1043456   ;;  %vm912_vm4 = vcmask (!%p449_p10), 31744  }
  0x17   : > { %1331 = vset.pattern.permute.xlu1 (!%p449_p10), %v1451_v4  ;;  %v619_v10 = vld [vmem:[%s1715_s3] sm:$0xff] (!%p449_p10) }
  0x18   : > { %709 = vperm.xlu1 (!%p449_p10), %1331, %v622_v3   ;;  %v821_v12 = vld [vmem:[%s1720_s8] sm:$0xf] (!%p449_p10) }
  0x19   : > { %v621_v22 = vld [vmem:[%s1717_s5] sm:$0xff] (!%p449_p10) }
  0x1a   : > { %v820_v29 = vld [vmem:[%s1719_s7] sm:$0xf] (!%p449_p10) }
  0x1b   : > { %v822_v40 = vld [vmem:[%s1721_s9] sm:$0xf] (!%p449_p10) }
  0x1c   : > { %s522_s22 = scalar_select %p521_p11, %s1438_s28, 1 }
  0x1e   : > { %s1581_s23 = sshll.u32 %s522_s22, 3  ;;  %s1231_s16 = sshll.u32 %s522_s22, 4 }
  0x1f   : > { %s527_s15 = scalar_lea.vmem %s1735_s0, %s1581_s23  ;;  %s549_s17 = scalar_lea.vmem %s1723_s11, %s1231_s16 }
  0x20   : > { %v550_v0 = vld [vmem:[%s527_s15] sm:$0xff]  ;;  %s534_s16 = scalar_lea.vmem %s1736_s1, %s1581_s23  ;;  %s541_s22 = scalar_lea.vmem %s1714_s2, %s1581_s23 }
  0x21   : > { %551 = vxpose.xlu0.b32.start.end [1/1] (short) (narrow) %v550_v0, 16  ;;  %v586_v11 = vld [vmem:[%s534_s16] sm:$0xff]  ;;  %s1227_s23 = sshll.u32 %s1438_s28, 7  ;;  %s1452_s1 = smov [#allocation2]  }
  0x22   : > { %v786_v30 = vld [vmem:[%s541_s22] sm:$0xff]  ;;  %s1639_s0 = scalar_lea.hbm %s1724_s12, %s1227_s23  ;;  %s1340_s14 = sshll.u32 %s1452_s1, 4  ;;  %s1341_s14 = int_to_ptr.vmem [resolvable:$false] %s1340_s14 }
  0x23   : > { %s1342_s15 = scalar_lea.vmem %s1341_s14, 256 }
  0x41   : > { %587 = vxpose.xlu1.b32.start.end [1/1] (short) (narrow) %v586_v11, 8 }
  0x4a   : > { %1330 = vset.pattern.permute.xlu0 %v1451_v4 }
  0x4e   : > { %625 = vperm.xlu0 %1330, %v620_v5  }
  0x52   : > { %909 = vperm.xlu0 %1330, %v823_v6  }
  0x5f   : > { %826 = vperm.xlu1 %1331, %v821_v12  }
  0x70   : > { %787 = vxpose.xlu0.b32.start.end [1/1] (short) (narrow) %v786_v30, 8 }
  0x97   : > { %v710_v23 = vpop.permute.xlu1 %709 }
  0xa1   : > { %v567_v7 = vpop.trf.xlu0 }
  0xa2   : > { %584 = vst.msk [vmem:[%s549_s17] sm:$0xff] %vm583_vm1, %v567_v7 }
  0xa5   : > { %v568_v8 = vpop.trf.xlu0 }
  0xa6   : > { %585 = vst.msk [vmem:[%s549_s17 + $0x8] sm:$0xff] %vm583_vm1, %v568_v8  ;;  %v1264_v9 = vpack.c.bf16 %v568_v8, %v567_v7  ;;  %s1620_s17 = sand.u32 1, %s1430_s26  }
  0xa7   : > { %s1213_s19 = sshll.u32 %s1620_s17, 3  ;;  %s1002_s21 = scalar_lea.sflag [#allocation3], %s1620_s17 }
  0xa8   : > { %1265 = vmatpush3.bf16.msra.mxu0 %v1264_v9  ;;  %s513_s29 = scalar_lea.vmem [#allocation2], %s1213_s19 }
  0xa9   : > { %1258 = vmatprep.subr.mxu0 %v1450_v2  ;;  %s1024_s16 = sshll.u32 %s513_s29, 4  ;;  %s1025_s16 = int_to_ptr.vmem [resolvable:$true] %s1024_s16 }
  0xaa   : > { %s1336_s22 = scalar_lea.vmem %s1025_s16, 128  ;;  %p1343_p1 = scmp.lt.s32.totalorder %s1025_s16, %s1341_s14 }
  0xab   : > { %1246 = vmatmul.mubr.msk.f32.vlgmr.msra.gmra.mrb[0].mxu0 %vm628_vm2, %v619_v10  ;;  %p1337_p12 = scmp.ne.s32.totalorder %s1025_s16, %s1336_s22  ;;  %p1344_p2 = scmp.lt.s32.totalorder %s1342_s15, %s1336_s22 }
  0xac   : > { %1260 = vmatprep.mubr.msk.f32.mxu0 %vm1449_vm0, %v1450_v2 }
  0xad   : > { %p1338_p13 = pnand %p1337_p12, %p1564_p4  ;;  %p1345_p3 = por %p1344_p2, %p1343_p1 }
  0xaf   : > { %p1339_p0 = pneg %p1338_p13 }
  0xb1   : > { %p1346_p5 = pnand %p1345_p3, %p1339_p0 }
  0xc1   : > { %v603_v27 = vpop.trf.xlu1 }
  0xcd   : > { %v626_v13 = vpop.permute.xlu0 %625 }
  0xde   : > { %v827_v31 = vpop.permute.xlu1 %826 }
 0x17e   : > { %v698_v14 = vpop.f32.mrb[0].mxu0 }
 0x17f   : > { %v699_v15 = vadd.f32 %v698_v14, %v626_v13  ;;  %v1247_v16 = vpop.f32.mrb[1].mxu0 }
 0x181   : > { %v703_v17 = vmul.f32 0.70710677, %v699_v15  ;;  %v702_v19 = vmul.f32 0.5, %v699_v15 }
 0x183   : > { %1332 = verf.f32 %v703_v17 }
 0x18d   : > { %v1333_v18 = vpop.eup %1332 }
 0x18e   : > { %v705_v20 = vadd.f32 1.0, %v1333_v18 }
 0x190   : > { %v706_v21 = vmul.f32 %v705_v20, %v702_v19 }
 0x192   : > { %1249 = vmatpush3.msra.mxu1 %v706_v21 }
 0x193   : > { %1251 = vmatmul.mubr.msk.f32.vlgmr.msra.gmra.mrb[0].mxu1 %vm583_vm1, %v621_v22  ;;  %1253 = vmatprep.subr.mxu1 %v1450_v2 }
 0x194   : > { %1255 = vmatprep.mubr.msk.f32.mxu1 %vm1449_vm0, %v1450_v2 }
 0x266   : > { %v781_v24 = vpop.f32.mrb[0].mxu1 }
 0x267   : > { %v782_v25 = vadd.f32 %v781_v24, %v710_v23  ;;  %v1252_v26 = vpop.f32.mrb[1].mxu1 }
 0x269   : > { %v785_v28 = vadd.f32 %v782_v25, %v603_v27 }
 0x26b   : > { %1254 = vmatpush3.msra.mxu1 %v785_v28  ;;  %819 = vst.msk [vmem:[%s513_s29] sm:$0xff] %vm583_vm1, %v785_v28 }
 0x26c   : > { %1256 = vmatmul.mubr.msk.f32.vlgmr.msra.gmra.mrb[2].mxu1 %vm583_vm1, %v820_v29 }
 0x33f   : > { %v898_v32 = vpop.f32.mrb[2].mxu1 }
 0x340   : > { %v899_v33 = vadd.f32 %v898_v32, %v827_v31  ;;  %v1257_v34 = vpop.f32.mrb[3].mxu1 }
 0x342   : > { %v903_v35 = vmul.f32 0.70710677, %v899_v33  ;;  %v902_v37 = vmul.f32 0.5, %v899_v33 }
 0x344   : > { %1334 = verf.f32 %v903_v35 }
 0x34e   : > { %v1335_v36 = vpop.eup %1334 }
 0x34f   : > { %v905_v38 = vadd.f32 1.0, %v1335_v36 }
 0x351   : > { %v906_v39 = vmul.f32 %v905_v38, %v902_v37 }
 0x353   : > { %1259 = vmatpush3.msk.msra.mxu0 %vm916_vm3, %v906_v39 }
 0x354   : > { %1261 = vmatmul.mubr.msk.f32.vlgmr.msra.gmra.mrb[2].mxu0 %vm912_vm4, %v822_v40 }
 0x355   : > { %1349 = shalt.err (!%p1346_p5)
}
 0x356   : > { %s1350_s29 = scalar_lea.hbm %s1639_s0, 128  ;;  %s1354_s1 = scalar_lea.hbm %s1724_s12, 256 }
 0x357   : > { %p1351_p6 = scmp.ne.s32.totalorder %s1639_s0, %s1350_s29  ;;  %p1355_p10 = scmp.lt.u32.totalorder %s1639_s0, %s1724_s12 }
 0x358   : > { %p1356_p11 = scmp.lt.u32.totalorder %s1354_s1, %s1350_s29  ;;  %p1358_p13 = scmp.lt.u32.totalorder %s1350_s29, %s1639_s0 }
 0x359   : > { %p1352_p7 = pnand %p1351_p6, %p1564_p4 }
 0x35a   : > { %p1357_p12 = por %p1356_p11, %p1355_p10 }
 0x35b   : > { %p1353_p9 = pneg %p1352_p7 }
 0x35c   : > { %p1359_p0 = por %p1358_p13, %p1357_p12 }
 0x35e   : > { %p1360_p1 = pnand %p1359_p0, %p1353_p9 }
 0x360   : > { %1363 = shalt.err (!%p1360_p1)
}
 0x361   : > { %1266 = dma.vmem_to_hbm [thread:$0]  (%p1564_p4), %s1025_s16, 128, %s1639_s0, %s1002_s21   ;;  %v910_v41 = vpop.permute.xlu0 %909  ;;  %vm991_vm5 = vcmask 60416  }
 0x362   : > { %s1214_s22 = sshll.u32 %s1620_s17, 2  ;;  %s1228_s15 = sshll.u32 %s1438_s28, 6 }
 0x363   : > { %s520_s23 = scalar_lea.vmem [#allocation4], %s1214_s22  ;;  %s1664_s24 = scalar_lea.hbm %s1725_s13, %s1228_s15 }
 0x364   : > { %s1038_s19 = sshll.u32 %s520_s23, 4  ;;  %s1007_s0 = scalar_lea.sflag [#allocation5], %s1620_s17  ;;  %s1666_s19 = int_to_ptr.vmem [resolvable:$true] %s1038_s19 }
 0x365   : > { %v803_v43 = vpop.trf.xlu0  ;;  %s1364_s16 = scalar_lea.vmem %s1666_s19, 64  ;;  %s1453_s28 = smov [#allocation4]  }
 0x366   : > { %p1365_p2 = scmp.ne.s32.totalorder %s1666_s19, %s1364_s16  ;;  %s1368_s21 = sshll.u32 %s1453_s28, 4  ;;  %s1369_s21 = int_to_ptr.vmem [resolvable:$false] %s1368_s21 }
 0x367   : > { %s1370_s14 = scalar_lea.vmem %s1369_s21, 128  ;;  %p1371_p6 = scmp.lt.s32.totalorder %s1666_s19, %s1369_s21 }
 0x368   : > { %p1366_p3 = pnand %p1365_p2, %p1564_p4  ;;  %p1372_p7 = scmp.lt.s32.totalorder %s1370_s14, %s1364_s16 }
 0x36a   : > { %p1367_p5 = pneg %p1366_p3  ;;  %p1373_p9 = por %p1372_p7, %p1371_p6 }
 0x36c   : > { %p1374_p10 = pnand %p1373_p9, %p1367_p5 }
 0x427   : > { %v986_v42 = vpop.f32.mrb[2].mxu0 }
 0x428   : > { %v987_v44 = vadd.f32 %v986_v42, %v910_v41  ;;  %v1262_v45 = vpop.f32.mrb[3].mxu0 }
 0x42a   : > { %v990_v46 = vadd.f32 %v987_v44, %v803_v43 }
 0x42c   : > { %992 = vst.msk [vmem:[%s520_s23] sm:$0xf] %vm991_vm5, %v990_v46 }
 0x42d   : > { %1377 = shalt.err (!%p1374_p10)
}
 0x42e   : > { %s1378_s17 = scalar_lea.hbm %s1664_s24, 64  ;;  %s1382_s23 = scalar_lea.hbm %s1725_s13, 128 }
 0x42f   : > { %p1379_p11 = scmp.ne.s32.totalorder %s1664_s24, %s1378_s17  ;;  %p1383_p0 = scmp.lt.u32.totalorder %s1664_s24, %s1725_s13 }
 0x430   : > { %p1384_p1 = scmp.lt.u32.totalorder %s1382_s23, %s1378_s17  ;;  %p1386_p3 = scmp.lt.u32.totalorder %s1378_s17, %s1664_s24 }
 0x431   : > { %p1380_p12 = pnand %p1379_p11, %p1564_p4 }
 0x432   : > { %p1385_p2 = por %p1384_p1, %p1383_p0 }
 0x433   : > { %p1381_p13 = pneg %p1380_p12 }
 0x434   : > { %p1387_p5 = por %p1386_p3, %p1385_p2 }
 0x436   : > { %p1388_p6 = pnand %p1387_p5, %p1381_p13 }
 0x438   : > { %1391 = shalt.err (!%p1388_p6)
}
 0x439   : > { %1267 = dma.vmem_to_hbm [thread:$0]  (%p1564_p4), %s1666_s19, 64, %s1664_s24, %s1007_s0  }
 0x43a PF: > { %p1277_p7 = scmp.ge.s32.totalorder %s1446_s30, 2  ;;  %s1061_s16 = sand.u32 1, %s1426_s25  }
 0x43b   : > { %s1062_s28 = scalar_lea.sflag [#allocation3], %s1061_s16 }
 0x43c   : > { %p1271_p9 = pnand %p1277_p7, %p1571_p8 }
 0x43e   : > { %1417 = dma.done.wait (!%p1271_p9), %s1062_s28, 128  }
 0x43f   : > { %1419 = vsyncadd (!%p1271_p9), %s1062_s28, 4294967168  ;;  %s1071_s21 = scalar_lea.sflag [#allocation5], %s1061_s16 }
 0x440   : > { %1421 = dma.done.wait (!%p1271_p9), %s1071_s21, 64  }
 0x441   : > { %1423 = vsyncadd (!%p1271_p9), %s1071_s21, 4294967232  ;;  %s30_s30 = sadd.s32 1, %s1446_s30   ;;  %s1737_s18 = sld [smem:[#allocation10_spill]] }
 0x442   : > { %p27_p10 = scmp.ge.s32.totalorder %s30_s30, 4   ;;  %s1738_s28 = sld [smem:[#allocation8_spill]] }
 0x443   : > { %s1739_s29 = sld [smem:[#allocation9_spill]]  ;;  %s1740_s25 = smov %s1430_s26 }
 0x444   : > { %s1741_s26 = smov %s1434_s27  ;;  %29 = sbr.rel (!%p27_p10) target bundleno = 9 (0x9), region = 134 }
 0x447   : > { %s1742_s27 = smov %s1737_s18 }
 0x44b   :  { %1076 = vsyncpa [#allocation3], 1 }
 0x44c   :  { %1078 = vsyncpa [#allocation3 + $0x1], 1 }
 0x44d   :  { %1079 = vsyncpa [#allocation5], 1 }
 0x44e   :  { %1081 = vsyncpa [#allocation5 + $0x1], 1 }

</bundles_post_ra>
